<compile_context>
chip_gen: v5e
topology: v5e:2x2
jax: 0.10.0
libtpu: 0.0.40
codegen_flags: <defaults>
</compile_context>

<pallas_src>
import jax
import jax.numpy as jnp
from jax.experimental import pallas as pl
from jax.experimental.pallas import tpu as pltpu


HIDDEN_DIM = 128   # matches the nn.Module default
IN_DIM = 4
IN_PAD = 8         # layer-1 contraction padded 4 -> 8 so it runs cleanly on the MXU
OUT_DIM = 2
OUT_PAD = 8        # narrow padded head (was 128) -> 16x less HBM writeback


def _round_up(x, m):
    return ((x + m - 1) // m) * m


def qnet_kernel(x_ref, w1_ref, b1_ref, w2_ref, b2_ref, w3_ref, b3_ref, out_ref):
    # ---- layer 1: [T, 8] @ [8, H] on the MXU (K zero-padded 4->8), f32 accumulate
    h1 = jnp.dot(x_ref[...], w1_ref[...],
                 preferred_element_type=jnp.float32) + b1_ref[...]
    h1 = jnp.maximum(h1, 0.0)                                   # [T, H] f32

    # ---- layer 2: [T, H] @ [H, 2H] on the MXU ((bf16|f32) in, f32 accumulate)
    h2 = jnp.dot(h1.astype(w2_ref.dtype), w2_ref[...],
                 preferred_element_type=jnp.float32) + b2_ref[...]
    h2 = jnp.maximum(h2, 0.0)                                   # [T, 2H] f32

    # ---- output head: [T, 2H] @ [2H, 8] (2 real columns + 6 zero-padded)
    y = jnp.dot(h2.astype(w3_ref.dtype), w3_ref[...],
                preferred_element_type=jnp.float32) + b3_ref[...]
    out_ref[...] = y.astype(out_ref.dtype)                      # [T, 8]


def _prep_params(params, use_bf16):
    """Pad w1 rows 4->8, pad the 2-wide head to 8 lanes, optionally cast matmul
    weights of layers 2/3 to bf16 (layer 1 stays f32 in both modes)."""
    w1, b1, w2, b2, w3, b3 = params
    mm_dtype = jnp.bfloat16 if use_bf16 else jnp.float32
    w1p = jnp.zeros((IN_PAD, w1.shape[1]), jnp.float32).at[:IN_DIM, :].set(w1)
    w3p = jnp.zeros((w3.shape[0], OUT_PAD), jnp.float32).at[:, :OUT_DIM].set(w3)
    b3p = jnp.zeros((1, OUT_PAD), jnp.float32).at[:, :OUT_DIM].set(b3)
    return (w1p, b1.astype(jnp.float32),
            w2.astype(mm_dtype), b2.astype(jnp.float32),
            w3p.astype(mm_dtype), b3p.astype(jnp.float32))


def qnet_forward(x, params, *, tile_b=4096, use_bf16=True):
    """x: [B, 4] float32 -> [B, 2] float32."""
    w1p, b1, w2, b2, w3p, b3p = _prep_params(params, use_bf16)
    H = w1p.shape[1]
    B = x.shape[0]

    # Batch tile: multiple of 8 (sublane), capped by the batch.
    tb = min(tile_b, _round_up(B, 8))
    # v7x megacore: if the whole batch would fit in one tile, split it so the
    # "parallel" grid axis has >= 2 steps (harmless single extra step on v5e/v6e).
    if 16 <= B <= tb:
        tb = pl.cdiv(B, 2)
    tb = max(8, _round_up(tb, 8))
    B_pad = _round_up(B, tb)

    # One pad covers both the K padding (4->8, always needed for the MXU layer-1)
    # and the ragged batch tail; padded rows produce garbage that is sliced off.
    x = jnp.pad(x, ((0, B_pad - B), (0, IN_PAD - IN_DIM)))

    grid = (B_pad // tb,)

    mm_bytes = 2 if use_bf16 else 4
    flops = 2 * B_pad * (IN_PAD * H + H * 2 * H + 2 * H * OUT_PAD)
    bytes_accessed = (B_pad * IN_PAD * 4 + B_pad * OUT_PAD * 4          # x read, y write
                      + IN_PAD * H * 4 + H * 4                          # w1, b1
                      + H * 2 * H * mm_bytes + 2 * H * 4                # w2, b2
                      + 2 * H * OUT_PAD * mm_bytes + OUT_PAD * 4)       # w3, b3

    out = pl.pallas_call(
        qnet_kernel,
        out_shape=jax.ShapeDtypeStruct((B_pad, OUT_PAD), jnp.float32),
        grid_spec=pltpu.PrefetchScalarGridSpec(
            num_scalar_prefetch=0,
            grid=grid,
            in_specs=[
                pl.BlockSpec((tb, IN_PAD), lambda i: (i, 0)),        # x tile (pipelined)
                pl.BlockSpec((IN_PAD, H), lambda i: (0, 0)),         # w1 (resident)
                pl.BlockSpec((1, H), lambda i: (0, 0)),              # b1
                pl.BlockSpec((H, 2 * H), lambda i: (0, 0)),          # w2
                pl.BlockSpec((1, 2 * H), lambda i: (0, 0)),          # b2
                pl.BlockSpec((2 * H, OUT_PAD), lambda i: (0, 0)),    # w3 (8-wide, resident)
                pl.BlockSpec((1, OUT_PAD), lambda i: (0, 0)),        # b3 (8-wide)
            ],
            out_specs=pl.BlockSpec((tb, OUT_PAD), lambda i: (i, 0)),
        ),
        compiler_params=pltpu.CompilerParams(
            dimension_semantics=("parallel",),      # shard batch tiles across TCs (v7x)
            vmem_limit_bytes=48 * 1024 * 1024,      # ~21 MiB real footprint at tb=4096
        ),
        cost_estimate=pl.CostEstimate(
            flops=flops, transcendentals=0, bytes_accessed=bytes_accessed),
    )(x, w1p, b1, w2, b2, w3p, b3p)

    return out[:B, :OUT_DIM]


def init_params(key, hidden_dim=HIDDEN_DIM):
    """Deterministic init mimicking PyTorch's U(-1/sqrt(fan_in), 1/sqrt(fan_in)).
    Weights are stored [in, out] so the kernel does x @ W + b (== PyTorch x @ W.T + b)."""
    dims = [(IN_DIM, hidden_dim), (hidden_dim, 2 * hidden_dim), (2 * hidden_dim, OUT_DIM)]
    params = []
    for fan_in, fan_out in dims:
        key, kw, kb = jax.random.split(key, 3)
        bound = 1.0 / jnp.sqrt(float(fan_in))
        w = jax.random.uniform(kw, (fan_in, fan_out), jnp.float32, -bound, bound)
        b = jax.random.uniform(kb, (1, fan_out), jnp.float32, -bound, bound)
        params += [w, b]
    return tuple(params)


def qnet_reference(x, params, use_bf16=False):
    """Plain-JAX reference matching the PyTorch forward (optionally bf16 for layers 2/3)."""
    w1, b1, w2, b2, w3, b3 = params
    mm = jnp.bfloat16 if use_bf16 else jnp.float32
    h1 = jnp.maximum(x @ w1 + b1, 0.0)
    h2 = jnp.maximum(
        jnp.dot(h1.astype(mm), w2.astype(mm), preferred_element_type=jnp.float32) + b2, 0.0)
    return jnp.dot(h2.astype(mm), w3.astype(mm), preferred_element_type=jnp.float32) + b3


if __name__ == "__main__":
    key = jax.random.PRNGKey(0)
    key, kx1, kx2, kx3 = jax.random.split(key, 4)
    params = init_params(key)

    # --- small batch (RL acting path), exact f32 semantics check ---
    batch = 8
    x = jax.random.normal(kx1, (batch, IN_DIM), dtype=jnp.float32)
    out_f32 = jax.block_until_ready(qnet_forward(x, params, use_bf16=False))
    ref_f32 = qnet_reference(x, params, use_bf16=False)
    assert out_f32.shape == (batch, OUT_DIM)
    assert jnp.allclose(out_f32, ref_f32, atol=1e-4, rtol=1e-4)

    # --- default fast path (bf16 MXU matmuls on layers 2/3, f32 accumulation) ---
    out_bf16 = jax.block_until_ready(qnet_forward(x, params, use_bf16=True))
    assert jnp.allclose(out_bf16, qnet_reference(x, params, use_bf16=True),
                        atol=3e-2, rtol=3e-2)
    assert jnp.allclose(out_bf16, ref_f32, atol=5e-2, rtol=5e-2)

    # --- mid batch with default tile: exercises the >=2-grid-step split (v7x) ---
    batch_mid = 40
    xm = jax.random.normal(kx3, (batch_mid, IN_DIM), dtype=jnp.float32)
    out_m = jax.block_until_ready(qnet_forward(xm, params, use_bf16=False))
    assert out_m.shape == (batch_mid, OUT_DIM)
    assert jnp.allclose(out_m, qnet_reference(xm, params, use_bf16=False),
                        atol=1e-4, rtol=1e-4)

    # --- ragged batch exercising the grid, batch padding and multi-tile pipeline ---
    batch2 = 300
    x2 = jax.random.normal(kx2, (batch2, IN_DIM), dtype=jnp.float32)
    out2 = jax.block_until_ready(qnet_forward(x2, params, tile_b=128, use_bf16=False))
    ref2 = qnet_reference(x2, params, use_bf16=False)
    assert out2.shape == (batch2, OUT_DIM)
    assert jnp.allclose(out2, ref2, atol=1e-4, rtol=1e-4)

    print("KERNEL_OK")
</pallas_src>

<mosaic_0001>
module attributes {stable_mosaic.version = 11 : i64} {
  func.func @qnet_kernel(%arg0: i32, %arg1: memref<8x8xf32, #tpu.memory_space<vmem>>, %arg2: memref<8x128xf32, #tpu.memory_space<vmem>>, %arg3: memref<1x128xf32, #tpu.memory_space<vmem>>, %arg4: memref<128x256xf32, #tpu.memory_space<vmem>>, %arg5: memref<1x256xf32, #tpu.memory_space<vmem>>, %arg6: memref<256x8xf32, #tpu.memory_space<vmem>>, %arg7: memref<1x8xf32, #tpu.memory_space<vmem>>, %arg8: memref<8x8xf32, #tpu.memory_space<vmem>>) attributes {dimension_semantics = [#tpu.dimension_semantics<parallel>], iteration_bounds = array<i64: 1>, scalar_prefetch = 0 : i64, scratch_operands = 0 : i64, tpu.core_type = #tpu.core_type<tc>, window_params = [{transform_indices = @transform_0, window_bounds = array<i64: 8, 8>}, {pipeline_mode = #tpu.pipeline_mode<synchronous>, transform_indices = @transform_1, window_bounds = array<i64: 8, 128>}, {pipeline_mode = #tpu.pipeline_mode<synchronous>, transform_indices = @transform_2, window_bounds = array<i64: 1, 128>}, {pipeline_mode = #tpu.pipeline_mode<synchronous>, transform_indices = @transform_3, window_bounds = array<i64: 128, 256>}, {pipeline_mode = #tpu.pipeline_mode<synchronous>, transform_indices = @transform_4, window_bounds = array<i64: 1, 256>}, {pipeline_mode = #tpu.pipeline_mode<synchronous>, transform_indices = @transform_5, window_bounds = array<i64: 256, 8>}, {pipeline_mode = #tpu.pipeline_mode<synchronous>, transform_indices = @transform_6, window_bounds = array<i64: 1, 8>}, {transform_indices = @transform_7, window_bounds = array<i64: 8, 8>}]} {
    %c0 = arith.constant 0 : index
    %c0_0 = arith.constant 0 : index
    %0 = vector.load %arg1[%c0, %c0_0] : memref<8x8xf32, #tpu.memory_space<vmem>>, vector<8x8xf32>
    %c0_1 = arith.constant 0 : index
    %c0_2 = arith.constant 0 : index
    %1 = vector.load %arg2[%c0_1, %c0_2] : memref<8x128xf32, #tpu.memory_space<vmem>>, vector<8x128xf32>
    %cst = arith.constant dense<0.000000e+00> : vector<8x128xf32>
    %2 = tpu.matmul %0, %1, %cst {dimension_numbers = #tpu.dot_dimension_numbers<[1], [0], [0], [1], [0, 0, 1, 1], [], []>} : vector<8x8xf32>, vector<8x128xf32>, vector<8x128xf32> -> vector<8x128xf32>
    %c0_3 = arith.constant 0 : index
    %c0_4 = arith.constant 0 : index
    %3 = vector.load %arg3[%c0_3, %c0_4] : memref<1x128xf32, #tpu.memory_space<vmem>>, vector<1x128xf32>
    %4 = vector.broadcast %3 : vector<1x128xf32> to vector<8x128xf32>
    %5 = arith.addf %2, %4 : vector<8x128xf32>
    %cst_5 = arith.constant 0.000000e+00 : f32
    %6 = vector.broadcast %cst_5 : f32 to vector<8x128xf32>
    %7 = arith.maximumf %5, %6 : vector<8x128xf32>
    %c0_6 = arith.constant 0 : index
    %c0_7 = arith.constant 0 : index
    %8 = vector.load %arg4[%c0_6, %c0_7] : memref<128x256xf32, #tpu.memory_space<vmem>>, vector<128x256xf32>
    %cst_8 = arith.constant dense<0.000000e+00> : vector<8x256xf32>
    %9 = tpu.matmul %7, %8, %cst_8 {dimension_numbers = #tpu.dot_dimension_numbers<[1], [0], [0], [1], [0, 0, 1, 1], [], []>} : vector<8x128xf32>, vector<128x256xf32>, vector<8x256xf32> -> vector<8x256xf32>
    %c0_9 = arith.constant 0 : index
    %c0_10 = arith.constant 0 : index
    %10 = vector.load %arg5[%c0_9, %c0_10] : memref<1x256xf32, #tpu.memory_space<vmem>>, vector<1x256xf32>
    %11 = vector.broadcast %10 : vector<1x256xf32> to vector<8x256xf32>
    %12 = arith.addf %9, %11 : vector<8x256xf32>
    %cst_11 = arith.constant 0.000000e+00 : f32
    %13 = vector.broadcast %cst_11 : f32 to vector<8x256xf32>
    %14 = arith.maximumf %12, %13 : vector<8x256xf32>
    %c0_12 = arith.constant 0 : index
    %c0_13 = arith.constant 0 : index
    %15 = vector.load %arg6[%c0_12, %c0_13] : memref<256x8xf32, #tpu.memory_space<vmem>>, vector<256x8xf32>
    %cst_14 = arith.constant dense<0.000000e+00> : vector<8x8xf32>
    %16 = tpu.matmul %14, %15, %cst_14 {dimension_numbers = #tpu.dot_dimension_numbers<[1], [0], [0], [1], [0, 0, 1, 1], [], []>} : vector<8x256xf32>, vector<256x8xf32>, vector<8x8xf32> -> vector<8x8xf32>
    %c0_15 = arith.constant 0 : index
    %c0_16 = arith.constant 0 : index
    %17 = vector.load %arg7[%c0_15, %c0_16] : memref<1x8xf32, #tpu.memory_space<vmem>>, vector<1x8xf32>
    %18 = vector.broadcast %17 : vector<1x8xf32> to vector<8x8xf32>
    %19 = arith.addf %16, %18 : vector<8x8xf32>
    %c0_17 = arith.constant 0 : index
    %c0_18 = arith.constant 0 : index
    %20 = vector.load %arg8[%c0_17, %c0_18] : memref<8x8xf32, #tpu.memory_space<vmem>>, vector<8x8xf32>
    tpu.vector_store %arg8[%c0_17, %c0_18], %19 {strides = array<i32>} : memref<8x8xf32, #tpu.memory_space<vmem>>, vector<8x8xf32>,
    return
  }
  func.func @transform_0(%arg0: i32) -> (i32, i32) {
    %c0_i32 = arith.constant 0 : i32
    %c0_i32_0 = arith.constant 0 : i32
    return %arg0, %c0_i32 : i32, i32
  }
  func.func @transform_1(%arg0: i32) -> (i32, i32) {
    %c0_i32 = arith.constant 0 : i32
    %c0_i32_0 = arith.constant 0 : i32
    %c0_i32_1 = arith.constant 0 : i32
    return %c0_i32, %c0_i32_0 : i32, i32
  }
  func.func @transform_2(%arg0: i32) -> (i32, i32) {
    %c0_i32 = arith.constant 0 : i32
    %c0_i32_0 = arith.constant 0 : i32
    %c0_i32_1 = arith.constant 0 : i32
    return %c0_i32, %c0_i32_0 : i32, i32
  }
  func.func @transform_3(%arg0: i32) -> (i32, i32) {
    %c0_i32 = arith.constant 0 : i32
    %c0_i32_0 = arith.constant 0 : i32
    %c0_i32_1 = arith.constant 0 : i32
    return %c0_i32, %c0_i32_0 : i32, i32
  }
  func.func @transform_4(%arg0: i32) -> (i32, i32) {
    %c0_i32 = arith.constant 0 : i32
    %c0_i32_0 = arith.constant 0 : i32
    %c0_i32_1 = arith.constant 0 : i32
    return %c0_i32, %c0_i32_0 : i32, i32
  }
  func.func @transform_5(%arg0: i32) -> (i32, i32) {
    %c0_i32 = arith.constant 0 : i32
    %c0_i32_0 = arith.constant 0 : i32
    %c0_i32_1 = arith.constant 0 : i32
    return %c0_i32, %c0_i32_0 : i32, i32
  }
  func.func @transform_6(%arg0: i32) -> (i32, i32) {
    %c0_i32 = arith.constant 0 : i32
    %c0_i32_0 = arith.constant 0 : i32
    %c0_i32_1 = arith.constant 0 : i32
    return %c0_i32, %c0_i32_0 : i32, i32
  }
  func.func @transform_7(%arg0: i32) -> (i32, i32) {
    %c0_i32 = arith.constant 0 : i32
    %c0_i32_0 = arith.constant 0 : i32
    return %arg0, %c0_i32 : i32, i32
  }
}

</mosaic_0001>

<bundles_post_ra>
// kernel: tpu_custom_call.1
= control target key start
LH: loop header
LB: loop body
LE: loop exit
PB: predicated region body
PF: predicated region fallthrough
CT: control target
= control target key end

     0   :  { %12 = vsyncpa [#allocation3], 0  ;;  %s557_s0 = inlined_call_operand.vmem [shape: f32[8,8], index: 0, kind: input, shape index: {}]   ;;  %s558_s1 = inlined_call_operand.vmem [shape: f32[8,128], index: 1, kind: input, shape index: {}]   ;;  %s559_s2 = inlined_call_operand.hbm [shape: f32[1,128], index: 2, kind: input, shape index: {}]   ;;  %s560_s3 = inlined_call_operand.vmem [shape: f32[128,256], index: 3, kind: input, shape index: {}]   ;;  %s561_s4 = inlined_call_operand.vmem [shape: f32[1,256], index: 4, kind: input, shape index: {}]   ;;  %s562_s5 = inlined_call_operand.vmem [shape: f32[256,8], index: 5, kind: input, shape index: {}]   ;;  %s563_s6 = inlined_call_operand.vmem [shape: f32[1,8], index: 6, kind: input, shape index: {}]   ;;  %s564_s7 = inlined_call_operand.hbm [shape: f32[8,8], index: 7, kind: output, shape index: {}]  }
   0x1   :  { %13 = vsyncpa [#allocation4], 0  ;;  %s23_s26 = sshll.u32 %s559_s2, 4  ;;  %s303_s27 = smov [#allocation2]   ;;  %s24_s26 = int_to_ptr.hbm [resolvable:$true] %s23_s26 }
   0x2   :  { %s25_s28 = sshll.u32 %s303_s27, 4  ;;  %s26_s28 = int_to_ptr.vmem [resolvable:$true] %s25_s28 }
   0x3   :  { %28 = dma.hbm_to_vmem [thread:$0]  %s24_s26, 16, %s26_s28, [#allocation3]  }
   0x4   :  { %299 = dma.done.wait [#allocation3], 16  }
   0x5   :  { %300 = vsyncadd [#allocation3], 4294967280  ;;  %vm47_vm0 = vcmask 64512   ;;  %v42_v0 = vld [vmem:[%s558_s1] sm:$0xff]  ;;  %v102_v2 = vld [vmem:[%s560_s3 + $0xf0] sm:$0xff] }
   0x6   :  { %v41_v1 = vld [vmem:[%s557_s0] sm:$0xff]  ;;  %66 = vmatpush.msra.mxu0 %v42_v0  ;;  %110 = vmatpush.msra.mxu1 %v102_v2  ;;  %v103_v3 = vld [vmem:[%s560_s3 + $0xf8] sm:$0xff]  ;;  %v101_v5 = vld [vmem:[%s560_s3 + $0xe8] sm:$0xff] }
   0x7   :  { %v100_v4 = vld [vmem:[%s560_s3 + $0xe0] sm:$0xff]  ;;  %246 = vmatmul.msk.f32.vlgmr.msra.gmra.mxu0 %vm47_vm0, %v41_v1  ;;  %130 = vmatpush.msra.mxu2 %v103_v3  ;;  %v98_v6 = vld [vmem:[%s560_s3 + $0xd0] sm:$0xff]  ;;  %v99_v7 = vld [vmem:[%s560_s3 + $0xd8] sm:$0xff] }
   0x8   :  { %111 = vmatpush.msra.mxu1 %v100_v4  ;;  %v96_v8 = vld [vmem:[%s560_s3 + $0xc0] sm:$0xff]  ;;  %v97_v9 = vld [vmem:[%s560_s3 + $0xc8] sm:$0xff]  ;;  %v94_v10 = vld [vmem:[%s560_s3 + $0xb0] sm:$0xff] }
   0x9   :  { %131 = vmatpush.msra.mxu2 %v101_v5  ;;  %v95_v11 = vld [vmem:[%s560_s3 + $0xb8] sm:$0xff]  ;;  %v92_v12 = vld [vmem:[%s560_s3 + $0xa0] sm:$0xff]  ;;  %v93_v13 = vld [vmem:[%s560_s3 + $0xa8] sm:$0xff] }
   0xa   :  { %112 = vmatpush.msra.mxu1 %v98_v6  ;;  %v90_v14 = vld [vmem:[%s560_s3 + $0x90] sm:$0xff]  ;;  %v91_v15 = vld [vmem:[%s560_s3 + $0x98] sm:$0xff]  ;;  %v88_v16 = vld [vmem:[%s560_s3 + $0x80] sm:$0xff] }
   0xb   :  { %132 = vmatpush.msra.mxu2 %v99_v7  ;;  %v89_v17 = vld [vmem:[%s560_s3 + $0x88] sm:$0xff]  ;;  %v86_v18 = vld [vmem:[%s560_s3 + $0x70] sm:$0xff]  ;;  %v87_v19 = vld [vmem:[%s560_s3 + $0x78] sm:$0xff] }
   0xc   :  { %113 = vmatpush.msra.mxu1 %v96_v8  ;;  %v84_v20 = vld [vmem:[%s560_s3 + $0x60] sm:$0xff]  ;;  %v85_v21 = vld [vmem:[%s560_s3 + $0x68] sm:$0xff]  ;;  %v82_v22 = vld [vmem:[%s560_s3 + $0x50] sm:$0xff] }
   0xd   :  { %133 = vmatpush.msra.mxu2 %v97_v9  ;;  %v83_v23 = vld [vmem:[%s560_s3 + $0x58] sm:$0xff]  ;;  %v80_v24 = vld [vmem:[%s560_s3 + $0x40] sm:$0xff]  ;;  %v81_v25 = vld [vmem:[%s560_s3 + $0x48] sm:$0xff] }
   0xe   :  { %114 = vmatpush.msra.mxu1 %v94_v10  ;;  %v78_v26 = vld [vmem:[%s560_s3 + $0x30] sm:$0xff]  ;;  %v79_v27 = vld [vmem:[%s560_s3 + $0x38] sm:$0xff]  ;;  %v76_v28 = vld [vmem:[%s560_s3 + $0x20] sm:$0xff] }
   0xf   :  { %134 = vmatpush.msra.mxu2 %v95_v11  ;;  %v77_v29 = vld [vmem:[%s560_s3 + $0x28] sm:$0xff]  ;;  %v74_v30 = vld [vmem:[%s560_s3 + $0x10] sm:$0xff]  ;;  %v75_v31 = vld [vmem:[%s560_s3 + $0x18] sm:$0xff] }
  0x10   :  { %115 = vmatpush.msra.mxu1 %v92_v12  ;;  %v72_v32 = vld [vmem:[%s560_s3] sm:$0xff]  ;;  %v73_v33 = vld [vmem:[%s560_s3 + $0x8] sm:$0xff]  ;;  %v167_v34 = vld [vmem:[%s562_s5 + $0x78] sm:$0xff] }
  0x11   :  { %135 = vmatpush.msra.mxu2 %v93_v13  ;;  %v166_v35 = vld [vmem:[%s562_s5 + $0x70] sm:$0xff]  ;;  %188 = vmatpush.msra.mxu3 %v167_v34  ;;  %v183_v36 = vld [vmem:[%s562_s5 + $0xf8] sm:$0xff]  ;;  %v165_v37 = vld [vmem:[%s562_s5 + $0x68] sm:$0xff] }
  0x12   :  { %116 = vmatpush.msra.mxu1 %v90_v14  ;;  %208 = vmatpush.msrb.mxu0 %v183_v36  ;;  %v182_v38 = vld [vmem:[%s562_s5 + $0xf0] sm:$0xff]  ;;  %v181_v39 = vld [vmem:[%s562_s5 + $0xe8] sm:$0xff]  ;;  %v164_v40 = vld [vmem:[%s562_s5 + $0x60] sm:$0xff] }
  0x13   :  { %136 = vmatpush.msra.mxu2 %v91_v15  ;;  %189 = vmatpush.msra.mxu3 %v166_v35  ;;  %v180_v41 = vld [vmem:[%s562_s5 + $0xe0] sm:$0xff]  ;;  %v163_v42 = vld [vmem:[%s562_s5 + $0x58] sm:$0xff]  ;;  %v162_v44 = vld [vmem:[%s562_s5 + $0x50] sm:$0xff] }
  0x14   :  { %117 = vmatpush.msra.mxu1 %v88_v16  ;;  %209 = vmatpush.msrb.mxu0 %v182_v38  ;;  %v179_v43 = vld [vmem:[%s562_s5 + $0xd8] sm:$0xff]  ;;  %v178_v45 = vld [vmem:[%s562_s5 + $0xd0] sm:$0xff]  ;;  %v161_v46 = vld [vmem:[%s562_s5 + $0x48] sm:$0xff] }
  0x15   :  { %137 = vmatpush.msra.mxu2 %v89_v17  ;;  %190 = vmatpush.msra.mxu3 %v165_v37  ;;  %v177_v47 = vld [vmem:[%s562_s5 + $0xc8] sm:$0xff]  ;;  %v160_v48 = vld [vmem:[%s562_s5 + $0x40] sm:$0xff]  ;;  %v159_v50 = vld [vmem:[%s562_s5 + $0x38] sm:$0xff] }
  0x16   :  { %118 = vmatpush.msra.mxu1 %v86_v18  ;;  %210 = vmatpush.msrb.mxu0 %v181_v39  ;;  %v176_v49 = vld [vmem:[%s562_s5 + $0xc0] sm:$0xff]  ;;  %v175_v51 = vld [vmem:[%s562_s5 + $0xb8] sm:$0xff]  ;;  %v158_v52 = vld [vmem:[%s562_s5 + $0x30] sm:$0xff] }
  0x17   :  { %138 = vmatpush.msra.mxu2 %v87_v19  ;;  %191 = vmatpush.msra.mxu3 %v164_v40  ;;  %v174_v53 = vld [vmem:[%s562_s5 + $0xb0] sm:$0xff]  ;;  %v157_v54 = vld [vmem:[%s562_s5 + $0x28] sm:$0xff]  ;;  %v156_v55 = vld [vmem:[%s562_s5 + $0x20] sm:$0xff] }
  0x18   :  { %119 = vmatpush.msra.mxu1 %v84_v20  ;;  %211 = vmatpush.msrb.mxu0 %v180_v41  ;;  %v155_v56 = vld [vmem:[%s562_s5 + $0x18] sm:$0xff]  ;;  %v249_v57 = vld [vmem:[#allocation2] ss:$0 sm:$0xff]  ;;  %v154_v61 = vld [vmem:[%s562_s5 + $0x10] sm:$0xff] }
  0x19   :  { %139 = vmatpush.msra.mxu2 %v85_v21  ;;  %192 = vmatpush.msra.mxu3 %v163_v42  ;;  %v173_v62 = vld [vmem:[%s562_s5 + $0xa8] sm:$0xff]  ;;  %v172_v0 = vld [vmem:[%s562_s5 + $0xa0] sm:$0xff]  ;;  %v171_v2 = vld [vmem:[%s562_s5 + $0x98] sm:$0xff] }
  0x1a   :  { %120 = vmatpush.msra.mxu1 %v82_v22  ;;  %212 = vmatpush.msrb.mxu0 %v179_v43  ;;  %v153_v63 = vld [vmem:[%s562_s5 + $0x8] sm:$0xff]  ;;  %v152_v1 = vld [vmem:[%s562_s5] sm:$0xff]  ;;  %v170_v3 = vld [vmem:[%s562_s5 + $0x90] sm:$0xff] }
  0x1b   :  { %140 = vmatpush.msra.mxu2 %v83_v23  ;;  %193 = vmatpush.msra.mxu3 %v162_v44  ;;  %v169_v4 = vld [vmem:[%s562_s5 + $0x88] sm:$0xff]  ;;  %v168_v5 = vld [vmem:[%s562_s5 + $0x80] sm:$0xff]  ;;  %s304_s5 = smov [#allocation5]  }
  0x1c   :  { %121 = vmatpush.msra.mxu1 %v80_v24  ;;  %213 = vmatpush.msrb.mxu0 %v178_v45  ;;  %v104_v6 = vld [vmem:[%s561_s4] sm:$0x3]  ;;  %s234_s9 = sshll.u32 %s304_s5, 4  ;;  %s236_s4 = sshll.u32 %s564_s7, 4  ;;  %s235_s9 = int_to_ptr.vmem [resolvable:$true] %s234_s9  ;;  %s237_s4 = int_to_ptr.hbm [resolvable:$true] %s236_s4 }
  0x1d   :  { %141 = vmatpush.msra.mxu2 %v81_v25  ;;  %194 = vmatpush.msra.mxu3 %v161_v46  ;;  %v106_v7 = vperm.slane %v104_v6, 0  ;;  %v107_v11 = vperm.slane %v104_v6, 1  ;;  %v250_v15 = vld [vmem:[%s563_s6] ss:$0 sm:$0xff] }
  0x1e   :  { %122 = vmatpush.msra.mxu1 %v78_v26  ;;  %214 = vmatpush.msrb.mxu0 %v177_v47 }
  0x1f   :  { %142 = vmatpush.msra.mxu2 %v79_v27  ;;  %195 = vmatpush.msra.mxu3 %v160_v48 }
  0x20   :  { %123 = vmatpush.msra.mxu1 %v76_v28  ;;  %215 = vmatpush.msrb.mxu0 %v176_v49 }
  0x21   :  { %143 = vmatpush.msra.mxu2 %v77_v29  ;;  %196 = vmatpush.msra.mxu3 %v159_v50 }
  0x22   :  { %124 = vmatpush.msra.mxu1 %v74_v30  ;;  %216 = vmatpush.msrb.mxu0 %v175_v51 }
  0x23   :  { %144 = vmatpush.msra.mxu2 %v75_v31  ;;  %197 = vmatpush.msra.mxu3 %v158_v52 }
  0x24   :  { %125 = vmatpush.msra.mxu1 %v72_v32  ;;  %217 = vmatpush.msrb.mxu0 %v174_v53 }
  0x25   :  { %145 = vmatpush.msra.mxu2 %v73_v33  ;;  %198 = vmatpush.msra.mxu3 %v157_v54 }
  0x26   :  { %218 = vmatpush.msrb.mxu0 %v173_v62 }
  0x27   :  { %199 = vmatpush.msra.mxu3 %v156_v55 }
  0x28   :  { %219 = vmatpush.msrb.mxu0 %v172_v0 }
  0x29   :  { %200 = vmatpush.msra.mxu3 %v155_v56 }
  0x2a   :  { %220 = vmatpush.msrb.mxu0 %v171_v2 }
  0x2b   :  { %201 = vmatpush.msra.mxu3 %v154_v61 }
  0x2c   :  { %221 = vmatpush.msrb.mxu0 %v170_v3 }
  0x2d   :  { %202 = vmatpush.msra.mxu3 %v153_v63 }
  0x2e   :  { %222 = vmatpush.msrb.mxu0 %v169_v4 }
  0x2f   :  { %203 = vmatpush.msra.mxu3 %v152_v1 }
  0x30   :  { %223 = vmatpush.msrb.mxu0 %v168_v5 }
  0x84   :  { %v68_v58 = vpop.f32.mrf.mxu0 }
  0x85   :  { %v69_v59 = vadd.f32 %v249_v57, %v68_v58 }
  0x87   :  { %v71_v60 = vmax.f32 %v69_v59, 0.0 }
  0x89   :  { %126 = vmatmul.f32.vlgmr.msra.gmra.mxu1 %v71_v60  ;;  %146 = vmatmul.f32.vlgmr.msra.gmra.mxu2 %v71_v60 }
 0x106   :  { %v127_v8 = vpop.f32.mrf.mxu1 }
 0x107   :  { %v128_v9 = vadd.f32 %v127_v8, %v106_v7 }
 0x109   :  { %v150_v10 = vmax.f32 %v128_v9, 0.0 }
 0x10b   :  { %204 = vmatmul.f32.vlgmr.msra.gmra.mxu3 %v150_v10 }
 0x10c   :  { %v147_v12 = vpop.f32.mrf.mxu2 }
 0x10d   :  { %v148_v13 = vadd.f32 %v147_v12, %v107_v11 }
 0x10f   :  { %v151_v14 = vmax.f32 %v148_v13, 0.0 }
 0x111   :  { %224 = vmatmul.f32.vlgmr.msrb.gmra.mxu0 %v151_v14 }
 0x18e   :  { %v205_v16 = vpop.f32.mrf.mxu3  ;;  %v225_v18 = vpop.f32.mrf.mxu0 }
 0x18f   :  { %v206_v17 = vadd.f32 %v250_v15, %v205_v16 }
 0x191   :  { %v226_v19 = vadd.f32 %v225_v18, %v206_v17 }
 0x193   :  { %228 = vst.msk [vmem:[#allocation5] sm:$0xff] %vm47_vm0, %v226_v19 }
 0x194   :  { %239 = dma.vmem_to_hbm [thread:$0]  %s235_s9, 128, %s237_s4, [#allocation4]  }
 0x195   :  { %301 = dma.done.wait [#allocation4], 128  }
 0x196   :  { %302 = vsyncadd [#allocation4], 4294967168 }
 0x197   :  { %244 = vsyncpa [#allocation3], 1 }
 0x198   :  { %245 = vsyncpa [#allocation4], 1 }

</bundles_post_ra>
